<compile_context>
chip_gen: v7x
topology: tpu7x:2x2x1
jax: 0.10.0
libtpu: 0.0.40
codegen_flags: <defaults>
</compile_context>

<pallas_src>
import functools

import jax
import jax.numpy as jnp
from jax.experimental import pallas as pl
from jax.experimental.pallas import tpu as pltpu


def _perceiver_attn_head_kernel(x_ref, lat_ref, wq_ref, wk_ref, wv_ref,
                                wout_ref, o_ref, acc_ref, *, compute_dtype):
    """One (batch_tile, head) pair per grid step.

    x_ref    : (Bt, N, D)    media tokens
    lat_ref  : (Bt, M, D)    latent tokens
    wq_ref   : (1, D, Dh)    per-head to_q weight (scale pre-folded)
    wk_ref   : (1, D, Dh)    per-head k half of to_kv
    wv_ref   : (1, D, Dh)    per-head v half of to_kv
    wout_ref : (1, Dh, D)    per-head slice of to_out
    o_ref    : (Bt, M, D)    output (written on the last head step)
    acc_ref  : (Bt, M, D)    f32 accumulator, resident across the head axis
    """
    h = pl.program_id(1)

    @pl.when(h == 0)
    def _init():
        acc_ref[...] = jnp.zeros_like(acc_ref)

    cd = compute_dtype
    f32 = jnp.float32

    Bt, N, D = x_ref.shape
    _, M, _ = lat_ref.shape
    Dh = wq_ref.shape[-1]

    # Flatten the batch tile into rows for lane-dense 2D projections.
    x2 = x_ref[...].reshape(Bt * N, D).astype(cd)
    lat2 = lat_ref[...].reshape(Bt * M, D).astype(cd)
    wq = wq_ref[0].astype(cd)          # (D, Dh), softmax scale already folded in
    wk = wk_ref[0].astype(cd)
    wv = wv_ref[0].astype(cd)
    wo = wout_ref[0].astype(cd)        # (Dh, D)

    # Projections (f32 accumulation on the MXU).
    q = jnp.dot(lat2, wq, preferred_element_type=f32).reshape(Bt, M, Dh)
    k_x = jnp.dot(x2, wk, preferred_element_type=f32).reshape(Bt, N, Dh)
    v_x = jnp.dot(x2, wv, preferred_element_type=f32).reshape(Bt, N, Dh)
    k_l = jnp.dot(lat2, wk, preferred_element_type=f32).reshape(Bt, M, Dh)
    v_l = jnp.dot(lat2, wv, preferred_element_type=f32).reshape(Bt, M, Dh)

    # Scores against the two key blocks (media tokens, then latents).
    # Softmax over their union == softmax over the concatenated kv sequence,
    # so no concat is ever materialized.
    qc = q.astype(cd)
    s_x = jnp.einsum('bid,bjd->bij', qc, k_x.astype(cd),
                     preferred_element_type=f32)          # (Bt, M, N)
    s_l = jnp.einsum('bid,bjd->bij', qc, k_l.astype(cd),
                     preferred_element_type=f32)          # (Bt, M, M)

    m = jnp.maximum(jnp.max(s_x, axis=-1, keepdims=True),
                    jnp.max(s_l, axis=-1, keepdims=True))  # (Bt, M, 1)
    e_x = jnp.exp(s_x - m)                                 # f32 softmax math
    e_l = jnp.exp(s_l - m)
    denom = (jnp.sum(e_x, axis=-1, keepdims=True) +
             jnp.sum(e_l, axis=-1, keepdims=True))         # (Bt, M, 1)

    # Unnormalized PV, then normalize the small (M, Dh) result (EUP reciprocal).
    pv = (jnp.einsum('bij,bjd->bid', e_x.astype(cd), v_x.astype(cd),
                     preferred_element_type=f32) +
          jnp.einsum('bij,bjd->bid', e_l.astype(cd), v_l.astype(cd),
                     preferred_element_type=f32))          # (Bt, M, Dh)
    out_h = pv * pl.reciprocal(denom, approx=True)

    # Fold this head's slice of to_out directly into the output accumulator:
    # concat_h(out_h) @ Wout == sum_h out_h @ Wout[h*Dh:(h+1)*Dh, :]
    out2 = out_h.reshape(Bt * M, Dh).astype(cd)
    acc_ref[...] += jnp.dot(out2, wo,
                            preferred_element_type=f32).reshape(Bt, M, D)

    @pl.when(h == pl.num_programs(1) - 1)
    def _finalize():
        o_ref[...] = acc_ref[...].astype(o_ref.dtype)


def _pick_batch_tile(B: int) -> int:
    """Largest divisor of B that is <= 8 and (when possible) keeps >= 2 batch
    blocks so the parallel grid axis can shard across v7x's two TensorCores."""
    best = 1
    for bt in range(1, min(B, 8) + 1):
        if B % bt == 0 and (B // bt >= 2 or B == 1):
            best = bt
    return best


def perceiver_attention(x, latents, wq_t, wkv_t, wout_t, *, heads, dim_head,
                        batch_tile=None, compute_dtype=None):
    """x: (B, N, D), latents: (B, M, D).  Weights pre-transposed (in, out).

    compute_dtype: dtype fed to the MXU (e.g. jnp.bfloat16 on v6e/v7x);
    accumulation and softmax math stay f32.  Defaults to the input dtype.
    """
    B, N, D = x.shape
    _, M, _ = latents.shape
    inner = heads * dim_head
    assert wq_t.shape == (D, inner)
    assert wkv_t.shape == (D, 2 * inner)
    assert wout_t.shape == (inner, D)

    if compute_dtype is None:
        compute_dtype = x.dtype
    if batch_tile is None:
        batch_tile = _pick_batch_tile(B)
    assert B % batch_tile == 0, "batch must be divisible by batch_tile"
    num_b = B // batch_tile

    scale = dim_head ** (-0.5)
    # Host-side (free) weight re-packing:
    #  - fold the softmax scale into wq,
    #  - split to_kv into k / v halves (no in-kernel slicing),
    #  - expose a leading head axis so the BlockSpec delivers per-head tiles.
    wq_h = (wq_t * scale).reshape(D, heads, dim_head).transpose(1, 0, 2)
    wk_h = wkv_t[:, :inner].reshape(D, heads, dim_head).transpose(1, 0, 2)
    wv_h = wkv_t[:, inner:].reshape(D, heads, dim_head).transpose(1, 0, 2)
    wo_h = wout_t.reshape(heads, dim_head, D)

    wq_h = wq_h.astype(compute_dtype)
    wk_h = wk_h.astype(compute_dtype)
    wv_h = wv_h.astype(compute_dtype)
    wo_h = wo_h.astype(compute_dtype)

    kernel = functools.partial(_perceiver_attn_head_kernel,
                               compute_dtype=compute_dtype)

    # TODO(synk): on v5e, D (and dim_head) below 128 lanes produce masked
    # partial stores; pad D/inner to 128 in the weights for production shapes.
    return pl.pallas_call(
        kernel,
        out_shape=jax.ShapeDtypeStruct((B, M, D), x.dtype),
        grid_spec=pltpu.PrefetchScalarGridSpec(
            num_scalar_prefetch=0,
            grid=(num_b, heads),          # reduction (head) axis last
            in_specs=[
                pl.BlockSpec((batch_tile, N, D), lambda b, h: (b, 0, 0)),
                pl.BlockSpec((batch_tile, M, D), lambda b, h: (b, 0, 0)),
                pl.BlockSpec((1, D, dim_head), lambda b, h: (h, 0, 0)),
                pl.BlockSpec((1, D, dim_head), lambda b, h: (h, 0, 0)),
                pl.BlockSpec((1, D, dim_head), lambda b, h: (h, 0, 0)),
                pl.BlockSpec((1, dim_head, D), lambda b, h: (h, 0, 0)),
            ],
            out_specs=pl.BlockSpec((batch_tile, M, D), lambda b, h: (b, 0, 0)),
            scratch_shapes=[pltpu.VMEM((batch_tile, M, D), jnp.float32)],
        ),
        compiler_params=pltpu.CompilerParams(
            dimension_semantics=("parallel", "arbitrary")),
    )(x, latents, wq_h, wk_h, wv_h, wo_h)


def perceiver_attention_ref(x, latents, wq_t, wkv_t, wout_t, *, heads, dim_head):
    """Pure-JAX reference mirroring the PyTorch module semantics."""
    inner = heads * dim_head
    scale = dim_head ** (-0.5)
    B, M, D = latents.shape

    q = latents @ wq_t                                      # (B, M, inner)
    kv_in = jnp.concatenate([x, latents], axis=1)           # (B, N+M, D)
    kv = kv_in @ wkv_t                                      # (B, N+M, 2*inner)
    k, v = kv[..., :inner], kv[..., inner:]

    def split_heads(t):
        b, s, _ = t.shape
        return t.reshape(b, s, heads, dim_head).transpose(0, 2, 1, 3)

    qh, kh, vh = split_heads(q) * scale, split_heads(k), split_heads(v)
    sim = jnp.einsum('bhid,bhjd->bhij', qh, kh)
    sim = sim - jnp.max(sim, axis=-1, keepdims=True)
    attn = jax.nn.softmax(sim, axis=-1)
    out = jnp.einsum('bhij,bhjd->bhid', attn, vh)
    out = out.transpose(0, 2, 1, 3).reshape(B, M, inner)
    return out @ wout_t


if __name__ == "__main__":
    # Small deterministic config
    B, N, M = 2, 16, 8           # batch, media tokens, latent tokens
    DIM, HEADS, DIM_HEAD = 32, 4, 8
    INNER = HEADS * DIM_HEAD

    key = jax.random.PRNGKey(0)
    k_x, k_lat, k_q, k_kv, k_out = jax.random.split(key, 5)

    x = jax.random.normal(k_x, (B, N, DIM), dtype=jnp.float32)
    latents = jax.random.normal(k_lat, (B, M, DIM), dtype=jnp.float32)

    # nn.Linear(dim, out) weight has shape (out, dim); store transposed (dim, out).
    wq_t = (jax.random.normal(k_q, (INNER, DIM), dtype=jnp.float32) * 0.05).T
    wkv_t = (jax.random.normal(k_kv, (2 * INNER, DIM), dtype=jnp.float32) * 0.05).T
    wout_t = (jax.random.normal(k_out, (DIM, INNER), dtype=jnp.float32) * 0.05).T

    out = perceiver_attention(x, latents, wq_t, wkv_t, wout_t,
                              heads=HEADS, dim_head=DIM_HEAD)
    out = jax.block_until_ready(out)

    ref = perceiver_attention_ref(x, latents, wq_t, wkv_t, wout_t,
                                  heads=HEADS, dim_head=DIM_HEAD)
    assert out.shape == (B, M, DIM)
    err = jnp.max(jnp.abs(out - ref))
    assert jnp.allclose(out, ref, atol=2e-3, rtol=2e-3), f"max abs err {err}"

    print("KERNEL_OK")
</pallas_src>

<mosaic_0001>
module attributes {stable_mosaic.version = 11 : i64} {
  func.func @_perceiver_attn_head_kernel(%arg0: i32, %arg1: i32, %arg2: memref<1x16x32xf32, #tpu.memory_space<vmem>>, %arg3: memref<1x8x32xf32, #tpu.memory_space<vmem>>, %arg4: memref<1x32x8xf32, #tpu.memory_space<vmem>>, %arg5: memref<1x32x8xf32, #tpu.memory_space<vmem>>, %arg6: memref<1x32x8xf32, #tpu.memory_space<vmem>>, %arg7: memref<1x8x32xf32, #tpu.memory_space<vmem>>, %arg8: memref<1x8x32xf32, #tpu.memory_space<vmem>>, %arg9: memref<1x8x32xf32, #tpu.memory_space<vmem>>) attributes {dimension_semantics = [#tpu.dimension_semantics<parallel>, #tpu.dimension_semantics<arbitrary>], iteration_bounds = array<i64: 2, 4>, scalar_prefetch = 0 : i64, scratch_operands = 1 : i64, tpu.core_type = #tpu.core_type<tc>, window_params = [{transform_indices = @transform_0, window_bounds = array<i64: 1, 16, 32>}, {transform_indices = @transform_1, window_bounds = array<i64: 1, 8, 32>}, {transform_indices = @transform_2, window_bounds = array<i64: 1, 32, 8>}, {transform_indices = @transform_3, window_bounds = array<i64: 1, 32, 8>}, {transform_indices = @transform_4, window_bounds = array<i64: 1, 32, 8>}, {transform_indices = @transform_5, window_bounds = array<i64: 1, 8, 32>}, {transform_indices = @transform_6, window_bounds = array<i64: 1, 8, 32>}]} {
    %c0_i32 = arith.constant 0 : i32
    %0 = arith.cmpi eq, %arg1, %c0_i32 : i32
    %1 = arith.extui %0 : i1 to i32
    %c0_i32_0 = arith.constant 0 : i32
    %2 = arith.cmpi ne, %1, %c0_i32_0 : i32
    scf.if %2 {
      %cst_38 = arith.constant 0.000000e+00 : f32
      %58 = vector.broadcast %cst_38 : f32 to vector<1x8x32xf32>
      %c0_39 = arith.constant 0 : index
      %c0_40 = arith.constant 0 : index
      %c0_41 = arith.constant 0 : index
      %59 = vector.load %arg9[%c0_39, %c0_40, %c0_41] : memref<1x8x32xf32, #tpu.memory_space<vmem>>, vector<1x8x32xf32>
      tpu.vector_store %arg9[%c0_39, %c0_40, %c0_41], %58 {strides = array<i32>} : memref<1x8x32xf32, #tpu.memory_space<vmem>>, vector<1x8x32xf32>,
    } else {
    }
    %c0 = arith.constant 0 : index
    %c0_1 = arith.constant 0 : index
    %c0_2 = arith.constant 0 : index
    %3 = vector.load %arg2[%c0, %c0_1, %c0_2] : memref<1x16x32xf32, #tpu.memory_space<vmem>>, vector<1x16x32xf32>
    %4 = vector.shape_cast %3 : vector<1x16x32xf32> to vector<16x32xf32>
    %c0_3 = arith.constant 0 : index
    %c0_4 = arith.constant 0 : index
    %c0_5 = arith.constant 0 : index
    %5 = vector.load %arg3[%c0_3, %c0_4, %c0_5] : memref<1x8x32xf32, #tpu.memory_space<vmem>>, vector<1x8x32xf32>
    %6 = vector.shape_cast %5 : vector<1x8x32xf32> to vector<8x32xf32>
    %c0_6 = arith.constant 0 : index
    %c0_7 = arith.constant 0 : index
    %c0_8 = arith.constant 0 : index
    %7 = vector.load %arg4[%c0_6, %c0_7, %c0_8] : memref<1x32x8xf32, #tpu.memory_space<vmem>>, vector<1x32x8xf32>
    %8 = vector.shape_cast %7 : vector<1x32x8xf32> to vector<32x8xf32>
    %c0_9 = arith.constant 0 : index
    %c0_10 = arith.constant 0 : index
    %c0_11 = arith.constant 0 : index
    %9 = vector.load %arg5[%c0_9, %c0_10, %c0_11] : memref<1x32x8xf32, #tpu.memory_space<vmem>>, vector<1x32x8xf32>
    %10 = vector.shape_cast %9 : vector<1x32x8xf32> to vector<32x8xf32>
    %c0_12 = arith.constant 0 : index
    %c0_13 = arith.constant 0 : index
    %c0_14 = arith.constant 0 : index
    %11 = vector.load %arg6[%c0_12, %c0_13, %c0_14] : memref<1x32x8xf32, #tpu.memory_space<vmem>>, vector<1x32x8xf32>
    %12 = vector.shape_cast %11 : vector<1x32x8xf32> to vector<32x8xf32>
    %c0_15 = arith.constant 0 : index
    %c0_16 = arith.constant 0 : index
    %c0_17 = arith.constant 0 : index
    %13 = vector.load %arg7[%c0_15, %c0_16, %c0_17] : memref<1x8x32xf32, #tpu.memory_space<vmem>>, vector<1x8x32xf32>
    %14 = vector.shape_cast %13 : vector<1x8x32xf32> to vector<8x32xf32>
    %cst = arith.constant dense<0.000000e+00> : vector<8x8xf32>
    %15 = tpu.matmul %6, %8, %cst {dimension_numbers = #tpu.dot_dimension_numbers<[1], [0], [0], [1], [0, 0, 1, 1], [], []>} : vector<8x32xf32>, vector<32x8xf32>, vector<8x8xf32> -> vector<8x8xf32>
    %16 = vector.shape_cast %15 : vector<8x8xf32> to vector<1x8x8xf32>
    %cst_18 = arith.constant dense<0.000000e+00> : vector<16x8xf32>
    %17 = tpu.matmul %4, %10, %cst_18 {dimension_numbers = #tpu.dot_dimension_numbers<[1], [0], [0], [1], [0, 0, 1, 1], [], []>} : vector<16x32xf32>, vector<32x8xf32>, vector<16x8xf32> -> vector<16x8xf32>
    %18 = vector.shape_cast %17 : vector<16x8xf32> to vector<1x16x8xf32>
    %cst_19 = arith.constant dense<0.000000e+00> : vector<16x8xf32>
    %19 = tpu.matmul %4, %12, %cst_19 {dimension_numbers = #tpu.dot_dimension_numbers<[1], [0], [0], [1], [0, 0, 1, 1], [], []>} : vector<16x32xf32>, vector<32x8xf32>, vector<16x8xf32> -> vector<16x8xf32>
    %20 = vector.shape_cast %19 : vector<16x8xf32> to vector<1x16x8xf32>
    %cst_20 = arith.constant dense<0.000000e+00> : vector<8x8xf32>
    %21 = tpu.matmul %6, %10, %cst_20 {dimension_numbers = #tpu.dot_dimension_numbers<[1], [0], [0], [1], [0, 0, 1, 1], [], []>} : vector<8x32xf32>, vector<32x8xf32>, vector<8x8xf32> -> vector<8x8xf32>
    %22 = vector.shape_cast %21 : vector<8x8xf32> to vector<1x8x8xf32>
    %cst_21 = arith.constant dense<0.000000e+00> : vector<8x8xf32>
    %23 = tpu.matmul %6, %12, %cst_21 {dimension_numbers = #tpu.dot_dimension_numbers<[1], [0], [0], [1], [0, 0, 1, 1], [], []>} : vector<8x32xf32>, vector<32x8xf32>, vector<8x8xf32> -> vector<8x8xf32>
    %24 = vector.shape_cast %23 : vector<8x8xf32> to vector<1x8x8xf32>
    "tpu.trace_start"() <{level = 10 : i32, message = "bid,bjd->bij"}> : () -> ()
    %cst_22 = arith.constant dense<0.000000e+00> : vector<1x8x16xf32>
    %25 = tpu.matmul %16, %18, %cst_22 {dimension_numbers = #tpu.dot_dimension_numbers<[2], [2], [1], [1], [0, 0, 0, 1, 1, 1], [0], [0]>} : vector<1x8x8xf32>, vector<1x16x8xf32>, vector<1x8x16xf32> -> vector<1x8x16xf32>
    %cst_23 = arith.constant dense<0.000000e+00> : vector<1x8x8xf32>
    %26 = tpu.matmul %16, %22, %cst_23 {dimension_numbers = #tpu.dot_dimension_numbers<[2], [2], [1], [1], [0, 0, 0, 1, 1, 1], [0], [0]>} : vector<1x8x8xf32>, vector<1x8x8xf32>, vector<1x8x8xf32> -> vector<1x8x8xf32>
    "tpu.trace_stop"() : () -> ()
    %cst_24 = arith.constant dense<0xFF800000> : vector<1x8xf32>
    %27 = vector.multi_reduction <maximumf>, %25, %cst_24 [2] : vector<1x8x16xf32> to vector<1x8xf32>
    %28 = vector.shape_cast %27 : vector<1x8xf32> to vector<1x8x1xf32>
    %cst_25 = arith.constant dense<0xFF800000> : vector<1x8xf32>
    %29 = vector.multi_reduction <maximumf>, %26, %cst_25 [2] : vector<1x8x8xf32> to vector<1x8xf32>
    %30 = vector.shape_cast %29 : vector<1x8xf32> to vector<1x8x1xf32>
    %31 = arith.maximumf %28, %30 : vector<1x8x1xf32>
    %32 = vector.broadcast %31 : vector<1x8x1xf32> to vector<1x8x16xf32>
    %33 = arith.subf %25, %32 : vector<1x8x16xf32>
    %34 = math.exp %33 : vector<1x8x16xf32>
    %35 = vector.broadcast %31 : vector<1x8x1xf32> to vector<1x8x8xf32>
    %36 = arith.subf %26, %35 : vector<1x8x8xf32>
    %37 = math.exp %36 : vector<1x8x8xf32>
    %cst_26 = arith.constant dense<0.000000e+00> : vector<1x8xf32>
    %38 = vector.multi_reduction <add>, %34, %cst_26 [2] : vector<1x8x16xf32> to vector<1x8xf32>
    %39 = vector.shape_cast %38 : vector<1x8xf32> to vector<1x8x1xf32>
    %cst_27 = arith.constant dense<0.000000e+00> : vector<1x8xf32>
    %40 = vector.multi_reduction <add>, %37, %cst_27 [2] : vector<1x8x8xf32> to vector<1x8xf32>
    %41 = vector.shape_cast %40 : vector<1x8xf32> to vector<1x8x1xf32>
    %42 = arith.addf %39, %41 : vector<1x8x1xf32>
    "tpu.trace_start"() <{level = 10 : i32, message = "bij,bjd->bid"}> : () -> ()
    %cst_28 = arith.constant dense<0.000000e+00> : vector<1x8x8xf32>
    %43 = tpu.matmul %34, %20, %cst_28 {dimension_numbers = #tpu.dot_dimension_numbers<[2], [1], [1], [2], [0, 0, 0, 1, 1, 2], [0], [0]>} : vector<1x8x16xf32>, vector<1x16x8xf32>, vector<1x8x8xf32> -> vector<1x8x8xf32>
    %cst_29 = arith.constant dense<0.000000e+00> : vector<1x8x8xf32>
    %44 = tpu.matmul %37, %24, %cst_29 {dimension_numbers = #tpu.dot_dimension_numbers<[2], [1], [1], [2], [0, 0, 0, 1, 1, 2], [0], [0]>} : vector<1x8x8xf32>, vector<1x8x8xf32>, vector<1x8x8xf32> -> vector<1x8x8xf32>
    "tpu.trace_stop"() : () -> ()
    %45 = arith.addf %43, %44 : vector<1x8x8xf32>
    %46 = tpu.reciprocal %42 {approx = true} : vector<1x8x1xf32> -> vector<1x8x1xf32>
    %47 = vector.broadcast %46 : vector<1x8x1xf32> to vector<1x8x8xf32>
    %48 = arith.mulf %45, %47 : vector<1x8x8xf32>
    %49 = vector.shape_cast %48 : vector<1x8x8xf32> to vector<8x8xf32>
    %c0_30 = arith.constant 0 : index
    %c0_31 = arith.constant 0 : index
    %c0_32 = arith.constant 0 : index
    %50 = vector.load %arg9[%c0_30, %c0_31, %c0_32] : memref<1x8x32xf32, #tpu.memory_space<vmem>>, vector<1x8x32xf32>
    %cst_33 = arith.constant dense<0.000000e+00> : vector<8x32xf32>
    %51 = tpu.matmul %49, %14, %cst_33 {dimension_numbers = #tpu.dot_dimension_numbers<[1], [0], [0], [1], [0, 0, 1, 1], [], []>} : vector<8x8xf32>, vector<8x32xf32>, vector<8x32xf32> -> vector<8x32xf32>
    %52 = vector.shape_cast %51 : vector<8x32xf32> to vector<1x8x32xf32>
    %53 = arith.addf %50, %52 : vector<1x8x32xf32>
    %c0_34 = arith.constant 0 : index
    %c0_35 = arith.constant 0 : index
    %c0_36 = arith.constant 0 : index
    %54 = vector.load %arg9[%c0_34, %c0_35, %c0_36] : memref<1x8x32xf32, #tpu.memory_space<vmem>>, vector<1x8x32xf32>
    tpu.vector_store %arg9[%c0_34, %c0_35, %c0_36], %53 {strides = array<i32>} : memref<1x8x32xf32, #tpu.memory_space<vmem>>, vector<1x8x32xf32>,
    %c3_i32 = arith.constant 3 : i32
    %55 = arith.cmpi eq, %arg1, %c3_i32 : i32
    %56 = arith.extui %55 : i1 to i32
    %c0_i32_37 = arith.constant 0 : i32
    %57 = arith.cmpi ne, %56, %c0_i32_37 : i32
    scf.if %57 {
      %c0_38 = arith.constant 0 : index
      %c0_39 = arith.constant 0 : index
      %c0_40 = arith.constant 0 : index
      %58 = vector.load %arg9[%c0_38, %c0_39, %c0_40] : memref<1x8x32xf32, #tpu.memory_space<vmem>>, vector<1x8x32xf32>
      %c0_41 = arith.constant 0 : index
      %c0_42 = arith.constant 0 : index
      %c0_43 = arith.constant 0 : index
      %59 = vector.load %arg8[%c0_41, %c0_42, %c0_43] : memref<1x8x32xf32, #tpu.memory_space<vmem>>, vector<1x8x32xf32>
      tpu.vector_store %arg8[%c0_41, %c0_42, %c0_43], %58 {strides = array<i32>} : memref<1x8x32xf32, #tpu.memory_space<vmem>>, vector<1x8x32xf32>,
    } else {
    }
    return
  }
  func.func @transform_0(%arg0: i32, %arg1: i32) -> (i32, i32, i32) {
    %c0_i32 = arith.constant 0 : i32
    %c0_i32_0 = arith.constant 0 : i32
    %c0_i32_1 = arith.constant 0 : i32
    return %arg0, %c0_i32, %c0_i32_0 : i32, i32, i32
  }
  func.func @transform_1(%arg0: i32, %arg1: i32) -> (i32, i32, i32) {
    %c0_i32 = arith.constant 0 : i32
    %c0_i32_0 = arith.constant 0 : i32
    %c0_i32_1 = arith.constant 0 : i32
    return %arg0, %c0_i32, %c0_i32_0 : i32, i32, i32
  }
  func.func @transform_2(%arg0: i32, %arg1: i32) -> (i32, i32, i32) {
    %c0_i32 = arith.constant 0 : i32
    %c0_i32_0 = arith.constant 0 : i32
    %c0_i32_1 = arith.constant 0 : i32
    return %arg1, %c0_i32, %c0_i32_0 : i32, i32, i32
  }
  func.func @transform_3(%arg0: i32, %arg1: i32) -> (i32, i32, i32) {
    %c0_i32 = arith.constant 0 : i32
    %c0_i32_0 = arith.constant 0 : i32
    %c0_i32_1 = arith.constant 0 : i32
    return %arg1, %c0_i32, %c0_i32_0 : i32, i32, i32
  }
  func.func @transform_4(%arg0: i32, %arg1: i32) -> (i32, i32, i32) {
    %c0_i32 = arith.constant 0 : i32
    %c0_i32_0 = arith.constant 0 : i32
    %c0_i32_1 = arith.constant 0 : i32
    return %arg1, %c0_i32, %c0_i32_0 : i32, i32, i32
  }
  func.func @transform_5(%arg0: i32, %arg1: i32) -> (i32, i32, i32) {
    %c0_i32 = arith.constant 0 : i32
    %c0_i32_0 = arith.constant 0 : i32
    %c0_i32_1 = arith.constant 0 : i32
    return %arg1, %c0_i32, %c0_i32_0 : i32, i32, i32
  }
  func.func @transform_6(%arg0: i32, %arg1: i32) -> (i32, i32, i32) {
    %c0_i32 = arith.constant 0 : i32
    %c0_i32_0 = arith.constant 0 : i32
    %c0_i32_1 = arith.constant 0 : i32
    return %arg0, %c0_i32, %c0_i32_0 : i32, i32, i32
  }
}

</mosaic_0001>

<bundles_post_ra>
// kernel: tpu_custom_call.1
= control target key start
LH: loop header
LB: loop body
LE: loop exit
PB: predicated region body
PF: predicated region fallthrough
CT: control target
= control target key end

     0   :  { %11 = vsyncpa [#allocation4], 0  ;;  %s1940_s0 = inlined_call_operand.vmem [shape: f32[2,16,32], index: 0, kind: input, shape index: {}]   ;;  %s1941_s1 = inlined_call_operand.vmem [shape: f32[2,8,32], index: 1, kind: input, shape index: {}]   ;;  %s1942_s2 = inlined_call_operand.vmem [shape: f32[4,32,8], index: 2, kind: input, shape index: {}]   ;;  %s1943_s3 = inlined_call_operand.vmem [shape: f32[4,32,8], index: 3, kind: input, shape index: {}]   ;;  %s1944_s4 = inlined_call_operand.vmem [shape: f32[4,32,8], index: 4, kind: input, shape index: {}]   ;;  %s1945_s5 = inlined_call_operand.vmem [shape: f32[4,8,32], index: 5, kind: input, shape index: {}]   ;;  %s1946_s6 = inlined_call_operand.hbm [shape: f32[2,8,32], index: 6, kind: output, shape index: {}]  }
   0x1   :  { %13 = vsyncpa [#allocation4 + $0x1], 0  ;;  %s1720_s21 = smov 0   ;;  %s1722_s22 = smov 0  }
   0x2   :  { %s1724_s23 = smov 0   ;;  %s1726_s24 = smov 0  }
   0x3   :  { %s1728_s25 = smov 0   ;;  %s1730_s26 = smov 0  }
   0x4   :  { %s1732_s27 = smov 0   ;;  %s1734_s28 = smov 0  }
   0x5 LB: > { %1956 = sst [smem:[#allocation6_spill]] %s1650_s21  ;;  %s1296_s29 = sadd.s32 4294967295, %s1678_s28   ;;  %s1678_s28 = sphi %s1734_s28, %s19_s28   ;;  %s1674_s27 = sphi %s1732_s27, %s1976_s27   ;;  %s1670_s26 = sphi %s1730_s26, %s1980_s26   ;;  %s1666_s25 = sphi %s1728_s25, %s1974_s25   ;;  %s1662_s24 = sphi %s1726_s24, %s1973_s24   ;;  %s1658_s23 = sphi %s1724_s23, %s1979_s23   ;;  %s1654_s22 = sphi %s1722_s22, %s1978_s22   ;;  %s1650_s21 = sphi %s1720_s21, %s1977_s21  }
   0x6   : > { %1957 = sst [smem:[#allocation7_spill]] %s1658_s23  ;;  %s1297_s30 = sadd.s32 4294967294, %s1678_s28  }
   0x7   : > { %1958 = sst [smem:[#allocation8_spill]] %s1670_s26  ;;  %s28_s7 = sadd.s32 1, %s1670_s26 }
   0x8   : > { %1959 = sst [smem:[#allocation9_spill]] %s1674_s27  ;;  %p29_p0 = scmp.ge.s32.totalorder %s28_s7, 4 }
   0x9   : > { %1960 = sst [smem:[#allocation10_spill]] %s1678_s28  ;;  %s31_s8 = sadd.s32 1, %s1674_s27 }
   0xa   : > { %p204_p1 = scmp.ne.s32.totalorder %s1658_s23, %s1654_s22  ;;  %p205_p2 = scmp.eq.s32.totalorder %s1296_s29, 7 }
   0xb   : > { %s1982_s7 = smov (%p29_p0, %s28_s7), 0  ;;  %s1984_s8 = smov (!%p29_p0, %s31_s8), %s1674_s27 }
   0xc   : > { %1961 = sst [smem:[#allocation11_spill]] %s1982_s7  ;;  %p1769_p3 = por %p205_p2, %p204_p1 }
   0xd   : > { %p210_p4 = scmp.ne.s32.totalorder %s1654_s22, %s1650_s21  ;;  %p33_p5 = scmp.ge.s32.totalorder %s1984_s8, 2 }
   0xe   : > { %p211_p6 = scmp.eq.s32.totalorder %s1297_s30, 7  ;;  %p1300_p7 = scmp.ge.s32.totalorder %s1678_s28, 1 }
   0xf   : > { %p275_p8 = scmp.lt.s32.totalorder %s1678_s28, 9  ;;  %s1986_s8 = smov (%p33_p5, %s1984_s8), 0 }
  0x10   : > { %1963 = sst [smem:[#allocation12_spill]] %s1986_s8  ;;  %p1779_p9 = por %p211_p6, %p210_p4 }
  0x11   : > { %p276_p10 = pnand %p1300_p7, %p275_p8  ;;  %s191_s11 = ssub.s32 %s1674_s27, %s1986_s8 }
  0x12   : > { %s1964_s10 = scalar_select %p1779_p9, 1, 0 }
  0x13   : > { %s194_s12 = sadd.s32 1, %s1658_s23  ;;  %p192_p11 = scmp.eq.s32.totalorder %s191_s11, 0 }
  0x14   : > { %1965 = sst [smem:[#allocation13_spill]] %s1964_s10  ;;  %279 = sbr.rel (%p276_p10) target bundleno = 1121 (0x461), region = 44 }
  0x15   : > { %s1787_s13 = scalar_select %p192_p11, %s1658_s23, %s194_s12  }
  0x16   : > { %s1949_s14 = sand.u32 (!%p276_p10), 1, %s1654_s22   ;;  %p328_p12 = scmp.lt.s32.totalorder (!%p276_p10), %s1666_s25, 1 }
  0x17   : > { %1966 = sst [smem:[#allocation14_spill]] %s1787_s13  ;;  %s1793_s15 = sshll.u32 (!%p276_p10), %s1949_s14, 3 }
  0x18   : > { %p337_p13 = scmp.lt.s32.totalorder (!%p276_p10), %s1662_s24, 3  ;;  %s327_s11 = scalar_lea.vmem (!%p276_p10), [#allocation3], %s1793_s15 }
  0x19   : > { %p1312_p0 = scmp.ne.s32.totalorder (!%p276_p10), %s1662_s24, 0 }
  0x1b   : > { %s329_s16 = scalar_select %p328_p12, %s1666_s25, 1 }
  0x1c   : > { %s338_s17 = scalar_select %p337_p13, %s1662_s24, 3 }
  0x1d   : > { %s1333_s18 = sshll.u32 %s329_s16, 4  ;;  %s1304_s19 = sshll.u32 %s329_s16, 3  ;;  %vm360_vm0 = vcmask (!%p1312_p0), 261120   ;;  %v1680_v0 = vmov (!%p1312_p0), 0.0  }
  0x1e   : > { %s1801_s30 = scalar_lea.vmem %s1940_s0, %s1333_s18  ;;  %s1806_s8 = scalar_lea.vmem %s1941_s1, %s1304_s19  ;;  %361 = vst.msk [vmem:[#allocation2] sm:$0xff] (!%p1312_p0), %vm360_vm0, %v1680_v0 }
  0x1f   : > { %s1334_s7 = sshll.u32 %s338_s17, 5  ;;  %s1311_s27 = sshll.u32 %s338_s17, 3 }
  0x20   : > { %s341_s13 = scalar_lea.vmem %s1942_s2, %s1334_s7  ;;  %s346_s16 = scalar_lea.vmem %s1943_s3, %s1334_s7 }
  0x21   : > { %s1817_s18 = scalar_lea.vmem %s1944_s4, %s1334_s7  ;;  %s1822_s19 = scalar_lea.vmem %s1945_s5, %s1311_s27 }
  0x22   : > { %359 = sbr.rel (%p1312_p0) target bundleno = 41 (0x29), region = 48 }
  0x29 PF: > { %v369_v1 = vld [vmem:[%s346_s16] sm:$0xff]  ;;  %v370_v2 = vld [vmem:[%s346_s16 + $0x8] sm:$0xff]  ;;  %v371_v3 = vld [vmem:[%s346_s16 + $0x10] sm:$0xff]  ;;  %vm378_vm1 = vcmask 261120   ;;  %v1681_v7 = vmov 0.0|0.0   ;;  %vm1682_vm2 = vmmov 0  }
  0x2a   : > { %v1466_v4 = vpack.c.bf16 %v370_v2, %v369_v1  ;;  %v372_v5 = vld [vmem:[%s346_s16 + $0x18] sm:$0xff]  ;;  %v362_v6 = vld [vmem:[%s1801_s30] sm:$0xff]  ;;  %1460 = vmatprep.subr.bf16.mxu0 %v1681_v7  ;;  %v366_v10 = vld [vmem:[%s341_s13 + $0x8] sm:$0xff]  ;;  %v1683_v12 = vmov 0.0   ;;  %vm748_vm3 = vcmask 64512   ;;  %vm901_vm5 = vcmask 130048  }
  0x2b   : > { %v1470_v8 = vpack.c.bf16 %v372_v5, %v371_v3  ;;  %1395 = vmatprep.mubr.msk.f32.mxu1 %vm378_vm1, %v362_v6  ;;  %v365_v9 = vld [vmem:[%s341_s13] sm:$0xff]  ;;  %v367_v11 = vld [vmem:[%s341_s13 + $0x10] sm:$0xff]  ;;  %1384 = vmatprep.mubr.msk.f32.mxu0 %vm1682_vm2, %v1683_v12  ;;  %v368_v14 = vld [vmem:[%s341_s13 + $0x18] sm:$0xff]  ;;  %p1328_p1 = scmp.ne.s32.totalorder %s1662_s24, 3 }
  0x2c   : > { %1467 = vmatprep.subr.bf16.mxu1 %v1466_v4  ;;  %v1461_v13 = vpack.c.bf16 %v366_v10, %v365_v9  ;;  %v373_v15 = vld [vmem:[%s1817_s18] sm:$0xff]  ;;  %v374_v16 = vld [vmem:[%s1817_s18 + $0x8] sm:$0xff]  ;;  %v1464_v17 = vpack.c.bf16 %v368_v14, %v367_v11  ;;  %v375_v20 = vld [vmem:[%s1817_s18 + $0x10] sm:$0xff] }
  0x2d   : > { %1469 = vmatpush3.bf16.msra.mxu1 %v1466_v4  ;;  %v1474_v18 = vpack.c.bf16 %v374_v16, %v373_v15  ;;  %v363_v19 = vld [vmem:[%s1801_s30 + $0x8] sm:$0xff]  ;;  %v376_v21 = vld [vmem:[%s1817_s18 + $0x18] sm:$0xff]  ;;  %v364_v22 = vld [vmem:[%s1806_s8] sm:$0xff] }
  0x2e   : > { %1471 = vmatprep.subr.bf16.mxu1 %v1470_v8  ;;  %1462 = vmatpush3.bf16.msra.mxu0 %v1461_v13  ;;  %v1478_v23 = vpack.c.bf16 %v376_v21, %v375_v20  ;;  %vm1496_vm4 = vmpackc.low %vm748_vm3, %vm748_vm3  ;;  %v377_v53 = vld [vmem:[%s1822_s19] sm:$0xff] }
  0x2f   : > { %1463 = vmatprep.subr.bf16.mxu0 %v1681_v7  ;;  %v1070_v61 = vld [vmem:[#allocation2] sm:$0xff] }
  0x31   : > { %1473 = vmatpush3.bf16.msra.mxu1 %v1470_v8 }
  0x32   : > { %1482 = vmatprep.subr.bf16.mxu1 %v1681_v7  ;;  %1465 = vmatpush3.bf16.msra.mxu0 %v1464_v17 }
  0x33   : > { %1475 = vmatprep.subr.bf16.mxu0 %v1474_v18 }
  0x34   : > { %1396 = vmatmul.mubr.msk.f32.vlgmr.msra.gmra.mrb[0].mxu1 %vm378_vm1, %v363_v19 }
  0x35   : > { %1484 = vmatpush3.bf16.msra.mxu1 %v1466_v4  ;;  %1417 = vmatprep.mubr.msk.f32.mxu1 %vm1682_vm2, %v1683_v12 }
  0x36   : > { %1485 = vmatprep.subr.bf16.mxu1 %v1681_v7  ;;  %1385 = vmatmul.mubr.msk.f32.vlgmr.msra.gmra.mrb[0].mxu0 %vm378_vm1, %v364_v22 }
  0x37   : > { %1477 = vmatpush3.bf16.msra.mxu0 %v1474_v18  ;;  %1406 = vmatprep.mubr.msk.f32.mxu0 %vm378_vm1, %v362_v6 }
  0x38   : > { %1479 = vmatprep.subr.bf16.mxu0 %v1478_v23 }
  0x39   : > { %1487 = vmatpush3.bf16.msra.mxu1 %v1470_v8 }
  0x3a   : > { %1494 = vmatprep.subr.bf16.mxu1 %v1681_v7 }
  0x3b   : > { %1481 = vmatpush3.bf16.msra.mxu0 %v1478_v23 }
  0x3c   : > { %1418 = vmatmul.mubr.msk.f32.vlgmr.msra.gmra.mrb[2].mxu1 %vm378_vm1, %v364_v22  ;;  %1488 = vmatprep.subr.bf16.mxu0 %v1681_v7 }
  0x3d   : > { %1435 = vmatprep.mubr.msk.f32.mxu1 %vm1682_vm2, %v1683_v12 }
  0x3e   : > { %1407 = vmatmul.mubr.msk.f32.vlgmr.msra.gmra.mrb[2].mxu0 %vm378_vm1, %v363_v19 }
  0x3f   : > { %1490 = vmatpush3.bf16.msra.mxu0 %v1474_v18  ;;  %1428 = vmatprep.mubr.msk.f32.mxu0 %vm1682_vm2, %v1683_v12 }
  0x40   : > { %1491 = vmatprep.subr.bf16.mxu0 %v1681_v7 }
  0x43   : > { %1493 = vmatpush3.bf16.msra.mxu0 %v1478_v23 }
  0x44   : > { %1438 = vmatprep.subr.mxu0 %v1683_v12 }
  0x46   : > { %1429 = vmatmul.mubr.msk.f32.vlgmr.msra.gmra.mrb[4].mxu0 %vm378_vm1, %v364_v22 }
  0x47   : > { %1440 = vmatprep.mubr.msk.f32.mxu0 %vm1682_vm2, %v1683_v12 }
 0x107   : > { %v1397_v24 = vpop.f32.mrb[0].mxu1 }
 0x108   : > { %v524_v25 = vpop.f32.mrb[1].mxu1 }
 0x109   : > { %v1495_v26 = vpack.c.bf16 %v1397_v24, %v524_v25  ;;  %v448_v27 = vpop.f32.mrb[0].mxu0 }
 0x10a   : > { %v1386_v28 = vpop.f32.mrb[1].mxu0 }
 0x10b   : > { %1497 = vmatpush3.bf16.xpose.msk.msra.mxu1 %vm1496_vm4, %v1495_v26 }
 0x10c   : > { %1443 = vmatprep.subr.mxu1 %v1683_v12 }
 0x10f   : > { %v674_v29 = vpop.f32.mrb[2].mxu1 }
 0x110   : > { %1439 = vmatpush3.xpose.msk.msra.mxu0 %vm748_vm3, %v674_v29  ;;  %v1419_v30 = vpop.f32.mrb[3].mxu1 }
 0x111   : > { %v1408_v31 = vpop.f32.mrb[2].mxu0  ;;  %1455 = vmatprep.subr.mxu0 %v1683_v12 }
 0x112   : > { %1436 = vmatmul.mubr.msk.f32.vlgmr.msra.gmra.mrb[4].mxu1 %vm748_vm3, %v448_v27  ;;  %v599_v32 = vpop.f32.mrb[3].mxu0 }
 0x113   : > { %1441 = vmatmul.mubr.msk.f32.vlgmr.msra.gmra.mrb[6].mxu0 %vm748_vm3, %v448_v27  ;;  %v1499_v33 = vpack.c.bf16 %v1408_v31, %v599_v32  ;;  %1445 = vmatprep.mubr.msk.f32.mxu1 %vm1682_vm2, %v1683_v12 }
 0x114   : > { %1457 = vmatprep.mubr.msk.f32.mxu0 %vm1682_vm2, %v1683_v12  ;;  %1456 = vmatpush3.msra.mxu0 %v377_v53 }
 0x119   : > { %v744_v34 = vpop.f32.mrb[4].mxu0 }
 0x11a   : > { %v1430_v35 = vpop.f32.mrb[5].mxu0  ;;  %1444 = vmatpush3.msra.mxu1 %v744_v34 }
 0x11b   : > { %1498 = vmatprep.subr.bf16.mxu1 %v1681_v7 }
 0x1e5   : > { %v824_v36 = vpop.f32.mrb[4].mxu1 }
 0x1e6   : > { %v1437_v37 = vpop.f32.mrb[5].mxu1  ;;  %v897_v38 = vpop.f32.mrb[6].mxu0  ;;  %v902_v39 = vsel %vm901_vm5, %v824_v36, -inf }
 0x1e7   : > { %v1442_v40 = vpop.f32.mrb[7].mxu0  ;;  %903 = vmax.xlane.f32.xlu0 %v902_v39  ;;  %v905_v41 = vsel %vm748_vm3, %v897_v38, -inf }
 0x1eb   : > { %906 = vmax.xlane.f32.xlu0 %v905_v41 }
 0x274   : > { %v904_v42 = vpop.xlane.xlu0 %903 }
 0x278   : > { %v907_v43 = vpop.xlane.xlu0 %906 }
 0x279   : > { %v908_v44 = vmax.f32 %v904_v42, %v907_v43 }
 0x27b   : > { %v909_v45 = vsub.f32 %v824_v36, %v908_v44  ;;  %v912_v46 = vsub.f32 %v897_v38, %v908_v44 }
 0x27d   : > { %v910_v47 = vmul.f32 1.442695, %v909_v45  ;;  %v913_v48 = vmul.f32 1.442695, %v912_v46 }
 0x27f   : > { %1578 = vpow2.f32 %v910_v47 }
 0x280   : > { %1580 = vpow2.f32 %v913_v48 }
 0x289   : > { %v1579_v49 = vpop.eup %1578 }
 0x28a   : > { %v1581_v50 = vpop.eup %1580  ;;  %v915_v51 = vsel %vm901_vm5, %v1579_v49, 0.0 }
 0x28b   : > { %1446 = vmatmul.mubr.msk.f32.vlgmr.msra.gmra.mrb[6].mxu1 %vm748_vm3, %v1581_v50  ;;  %916 = vadd.xlane.f32.xlu1 %v915_v51  ;;  %v918_v52 = vsel %vm748_vm3, %v1581_v50, 0.0 }
 0x28c   : > { %1500 = vmatpush3.bf16.msra.mxu1 %v1499_v33  ;;  %1452 = vmatprep.mubr.msk.f32.mxu1 %vm1682_vm2, %v1683_v12 }
 0x28f   : > { %919 = vadd.xlane.f32.xlu1 %v918_v52 }
 0x293   : > { %1453 = vmatmul.mubr.msk.f32.vlgmr.msra.gmra.mrb[6].mxu1 %vm901_vm5, %v1579_v49 }
 0x318   : > { %v917_v54 = vpop.xlane.xlu1 %916 }
 0x31c   : > { %v920_v55 = vpop.xlane.xlu1 %919 }
 0x31d   : > { %v921_v56 = vadd.f32 %v920_v55, %v917_v54 }
 0x31f   : > { %1582 = vrcp.f32 %v921_v56 }
 0x329   : > { %v1583_v57 = vpop.eup %1582 }
 0x366   : > { %v1064_v58 = vpop.f32.mrb[6].mxu1 }
 0x367   : > { %v1069_v59 = vmul.f32 %v1583_v57, %v1064_v58  ;;  %v1454_v60 = vpop.f32.mrb[7].mxu1 }
 0x369   : > { %1458 = vmatmul.mubr.msk.f32.vlgmr.msra.gmra.mrb[8].mxu0 %vm748_vm3, %v1069_v59 }
 0x439   : > { %1149 = sbr.rel (%p1328_p1) target bundleno = 1096 (0x448), region = 52 }
 0x43c   : > { %v1140_v62 = vpop.f32.mrb[8].mxu0 }
 0x43d   : > { %v1144_v63 = vadd.f32 %v1140_v62, %v1070_v61  ;;  %v1459_v0 = vpop.f32.mrb[9].mxu0 }
 0x43f   : > { %1145 = vst.msk [vmem:[#allocation2] sm:$0xff] %vm378_vm1, %v1144_v63 }
 0x446   : > { %v1150_v1 = vld [vmem:[#allocation2] sm:$0xff] }
 0x447   : > { %1151 = vst.msk [vmem:[%s327_s11] sm:$0xff] %vm378_vm1, %v1150_v1 }
 0x448 PF: > { %s1330_s21 = sshll.u32 %s1666_s25, 7  ;;  %s1166_s28 = sshll.u32 %s327_s11, 4  ;;  %s1167_s28 = int_to_ptr.vmem [resolvable:$true] %s1166_s28 }
 0x449   : > { %s1889_s27 = scalar_lea.hbm %s1946_s6, %s1330_s21  ;;  %s1967_s24 = sand.u32 1, %s1654_s22  }
 0x44a   : > { %s1153_s7 = scalar_lea.sflag [#allocation4], %s1967_s24  ;;  %s1584_s8 = scalar_lea.vmem %s1167_s28, 128 }
 0x44b   : > { %p1585_p2 = scmp.ne.s32.totalorder %s1167_s28, %s1584_s8  ;;  %s1684_s10 = smov [#allocation3]  }
 0x44c   : > { %s1588_s13 = sshll.u32 %s1684_s10, 4  ;;  %s1589_s13 = int_to_ptr.vmem [resolvable:$false] %s1588_s13 }
 0x44d   : > { %p1586_p4 = pnand %p1585_p2, %p1769_p3  ;;  %s1590_s14 = scalar_lea.vmem %s1589_s13, 256 }
 0x44e   : > { %p1591_p6 = scmp.lt.s32.totalorder %s1167_s28, %s1589_s13  ;;  %p1592_p7 = scmp.lt.s32.totalorder %s1590_s14, %s1584_s8 }
 0x44f   : > { %p1587_p5 = pneg %p1586_p4 }
 0x450   : > { %p1593_p8 = por %p1592_p7, %p1591_p6 }
 0x452   : > { %p1594_p10 = pnand %p1593_p8, %p1587_p5 }
 0x454   : > { %1597 = shalt.err (!%p1594_p10)
}
 0x455   : > { %s1598_s25 = scalar_lea.hbm %s1889_s27, 128  ;;  %s1602_s30 = scalar_lea.hbm %s1946_s6, 256 }
 0x456   : > { %p1599_p11 = scmp.ne.s32.totalorder %s1889_s27, %s1598_s25  ;;  %p1603_p0 = scmp.lt.u32.totalorder %s1889_s27, %s1946_s6 }
 0x457   : > { %p1604_p1 = scmp.lt.u32.totalorder %s1602_s30, %s1598_s25  ;;  %p1606_p4 = scmp.lt.u32.totalorder %s1598_s25, %s1889_s27 }
 0x458   : > { %p1600_p12 = pnand %p1599_p11, %p1769_p3 }
 0x459   : > { %p1605_p2 = por %p1604_p1, %p1603_p0 }
 0x45a   : > { %p1601_p13 = pneg %p1600_p12 }
 0x45b   : > { %p1607_p5 = por %p1606_p4, %p1605_p2 }
 0x45d   : > { %p1608_p6 = pnand %p1607_p5, %p1601_p13 }
 0x45f   : > { %1611 = shalt.err (!%p1608_p6)
}
 0x460   : > { %1503 = dma.vmem_to_hbm [thread:$0]  (%p1769_p3), %s1167_s28, 128, %s1889_s27, %s1153_s7  }
 0x461 PF: > { %s1968_s18 = sld [smem:[#allocation10_spill]]  ;;  %s1969_s20 = sld [smem:[#allocation6_spill]] }
 0x467   : > { %p1509_p7 = scmp.ge.s32.totalorder %s1968_s18, 2  ;;  %s1178_s19 = sand.u32 1, %s1969_s20  }
 0x468   : > { %s1179_s11 = scalar_lea.sflag [#allocation4], %s1178_s19 }
 0x469   : > { %p1506_p8 = pnand %p1509_p7, %p1779_p9 }
 0x46b   : > { %1645 = dma.done.wait (!%p1506_p8), %s1179_s11, 128  }
 0x46c   : > { %1647 = vsyncadd (!%p1506_p8), %s1179_s11, 4294967168  ;;  %s19_s28 = sadd.s32 1, %s1968_s18   ;;  %s1971_s23 = sld [smem:[#allocation7_spill]] }
 0x46d   : > { %p16_p10 = scmp.ge.s32.totalorder %s19_s28, 10   ;;  %s1972_s26 = sld [smem:[#allocation14_spill]] }
 0x46e   : > { %s1973_s24 = sld [smem:[#allocation8_spill]]  ;;  %s1974_s25 = sld [smem:[#allocation9_spill]] }
 0x46f   : > { %s1975_s9 = sld [smem:[#allocation11_spill]]  ;;  %s1976_s27 = sld [smem:[#allocation12_spill]] }
 0x470   : > { %s1977_s21 = smov %s1654_s22  ;;  %18 = sbr.rel (!%p16_p10) target bundleno = 5 (0x5), region = 102 }
 0x472   : > { %s1978_s22 = smov %s1971_s23 }
 0x473   : > { %s1979_s23 = smov %s1972_s26 }
 0x475   : > { %s1980_s26 = smov %s1975_s9 }
 0x477   :  { %1184 = vsyncpa [#allocation4], 1 }
 0x478   :  { %1186 = vsyncpa [#allocation4 + $0x1], 1 }

</bundles_post_ra>
